<compile_context>
chip_gen: v7x
topology: tpu7x:2x2x1
jax: 0.10.0
libtpu: 0.0.40
codegen_flags: <defaults>
</compile_context>

<pallas_src>
import jax
import jax.numpy as jnp
from jax.experimental import pallas as pl
from jax.experimental.pallas import tpu as pltpu

_MAX_LANE = 2048          # max lane-dense width (multiple of 128)
_FALLBACK_LANE = 512      # lane width for the ragged-prefix fallback
_SUBLANE_QUANTUM = 32     # row granularity: full vregs for f32 / bf16 / int8


def _mish_kernel(x_ref, o_ref):
    x = x_ref[...].astype(jnp.float32)
    # tanh(softplus(x)) == t / (t + 2), t = e*(e+2), e = exp(x).
    # Clamp at 20 (PyTorch softplus threshold); e(20)^2 ~ 2.4e17 << f32 max.
    e = jnp.exp(jnp.minimum(x, 20.0))
    t = e * (e + 2.0)
    den = t + 2.0
    # Approximate reciprocal on the EUP slot, then two Newton steps on the VPU
    # (VPU has plenty of slack in this HBM-bound kernel) to restore f32 accuracy.
    r = pl.reciprocal(den, approx=True)
    r = r * (2.0 - den * r)
    r = r * (2.0 - den * r)
    o_ref[...] = (x * (t * r)).astype(o_ref.dtype)


def _mish_jnp(x):
    """Plain-jnp Mish for tiny / ragged tails (same algebra as the kernel)."""
    xf = x.astype(jnp.float32)
    e = jnp.exp(jnp.minimum(xf, 20.0))
    t = e * (e + 2.0)
    return (xf * (t / (t + 2.0))).astype(x.dtype)


def _device_kind() -> str:
    try:
        return jax.devices()[0].device_kind.lower()
    except Exception:
        return ""


def _target_tile_bytes(kind: str) -> int:
    # Per-step HBM bytes per tile; 4 buffers (2-deep pipeline of in + out) of
    # this size must fit the default scoped VMEM of the generation.
    if "v7" in kind:
        return 6 * 1024 * 1024   # 4 x 6 MiB = 24 MiB < 32 MiB default (64 MiB phys)
    if "v6" in kind:
        return 6 * 1024 * 1024   # 4 x 6 MiB = 24 MiB < 32 MiB default
    if "v5" in kind:
        return 3 * 1024 * 1024   # 4 x 3 MiB = 12 MiB < 16 MiB default on v5e
    return 3 * 1024 * 1024       # conservative default for unknown parts


def _pick_lane_width(n: int):
    """Largest multiple of 128 (<= _MAX_LANE) that divides n; None if 128 does not divide n."""
    if n % 128 != 0:
        return None
    m = n // 128
    for d in range(_MAX_LANE // 128, 0, -1):
        if m % d == 0:
            return 128 * d
    return 128


def _choose_block_rows(rows: int, lane_w: int, itemsize: int) -> int:
    kind = _device_kind()
    target = _target_tile_bytes(kind)
    two_cores = "v7" in kind  # v7x has 2 TensorCores per chip

    rows_per_tile = max(_SUBLANE_QUANTUM, target // (lane_w * itemsize))
    rows_per_tile = (rows_per_tile // _SUBLANE_QUANTUM) * _SUBLANE_QUANTUM

    if rows_per_tile >= rows:
        # Whole array fits a single tile. On a 2-TC part, split in half so the
        # "parallel" grid axis can feed both cores (grid=(1,) leaves one idle).
        if two_cores and rows >= 2 * _SUBLANE_QUANTUM:
            half = pl.cdiv(pl.cdiv(rows, 2), _SUBLANE_QUANTUM) * _SUBLANE_QUANTUM
            return half
        return rows  # block equal to the full dim is always legal

    block_rows = rows_per_tile
    if two_cores:
        nblocks = pl.cdiv(rows, block_rows)
        if 1 < nblocks < 8 and nblocks % 2 == 1:
            # Nudge small odd step counts to even for megacore balance.
            even = nblocks + 1
            cand = pl.cdiv(pl.cdiv(rows, even), _SUBLANE_QUANTUM) * _SUBLANE_QUANTUM
            if cand >= _SUBLANE_QUANTUM and pl.cdiv(rows, cand) % 2 == 0:
                block_rows = cand  # cand <= block_rows, so VMEM budget still holds
    return block_rows


def _mish_2d(x2d: jax.Array) -> jax.Array:
    rows, lane_w = x2d.shape
    block_rows = _choose_block_rows(rows, lane_w, x2d.dtype.itemsize)
    grid = (pl.cdiv(rows, block_rows),)

    return pl.pallas_call(
        _mish_kernel,
        out_shape=jax.ShapeDtypeStruct((rows, lane_w), x2d.dtype),
        grid=grid,
        in_specs=[pl.BlockSpec((block_rows, lane_w), lambda i: (i, 0))],
        out_specs=pl.BlockSpec((block_rows, lane_w), lambda i: (i, 0)),
        compiler_params=pltpu.CompilerParams(
            dimension_semantics=("parallel",)  # megacore split on v7x
        ),
    )(x2d)


def mish(x: jax.Array) -> jax.Array:
    """Elementwise Mish. Accepts any shape/float dtype, returns same shape/dtype."""
    orig_shape = x.shape
    n = x.size
    if n == 0:
        return x

    flat = x.reshape(-1)
    lane_w = _pick_lane_width(n)

    if lane_w is not None:
        # Zero-copy path: lane-dense (rows, lane_w) view, full-width row blocks.
        out2d = _mish_2d(flat.reshape(n // lane_w, lane_w))
        return out2d.reshape(orig_shape)

    # Rare fallback (n not a multiple of 128): Pallas on the largest
    # lane-divisible prefix, plain jnp on the short tail. Avoids the previous
    # full-tensor pad + slice round trip through HBM.
    n_main = (n // _FALLBACK_LANE) * _FALLBACK_LANE
    if n_main == 0:
        return _mish_jnp(flat).reshape(orig_shape)
    main = _mish_2d(flat[:n_main].reshape(n_main // _FALLBACK_LANE, _FALLBACK_LANE))
    tail = _mish_jnp(flat[n_main:])
    return jnp.concatenate([main.reshape(-1), tail]).reshape(orig_shape)


def _mish_ref(x):
    xf = x.astype(jnp.float32)
    sp = jnp.where(xf > 20.0, xf, jnp.log1p(jnp.exp(jnp.minimum(xf, 20.0))))
    return (xf * jnp.tanh(sp)).astype(x.dtype)


if __name__ == "__main__":
    key = jax.random.PRNGKey(0)

    # NCHW input, like a conv feature map: batch=2, channels=4, spatial=16x16.
    x = jax.random.normal(key, (2, 4, 16, 16), dtype=jnp.float32) * 3.0
    y = mish(x)
    jax.block_until_ready(y)
    assert y.shape == x.shape and y.dtype == x.dtype
    assert jnp.allclose(y, _mish_ref(x), atol=1e-5, rtol=1e-5)

    # Extreme values (exercise the x>20 clamp and large-negative underflow).
    xe = jnp.linspace(-60.0, 60.0, 1024, dtype=jnp.float32).reshape(8, 128)
    ye = mish(xe)
    jax.block_until_ready(ye)
    assert jnp.allclose(ye, _mish_ref(xe), atol=1e-5, rtol=1e-5)

    # Tiny odd-sized input -> pure-jnp tail path.
    x2 = jax.random.normal(jax.random.PRNGKey(1), (3, 5, 7), dtype=jnp.float32) * 3.0
    y2 = mish(x2)
    jax.block_until_ready(y2)
    assert jnp.allclose(y2, _mish_ref(x2), atol=1e-5, rtol=1e-5)

    # Non-128-divisible size -> Pallas prefix + jnp tail path.
    x3 = jax.random.normal(jax.random.PRNGKey(2), (1, 1, 23, 29), dtype=jnp.float32) * 3.0
    y3 = mish(x3)
    jax.block_until_ready(y3)
    assert jnp.allclose(y3, _mish_ref(x3), atol=1e-5, rtol=1e-5)

    print("KERNEL_OK")
</pallas_src>

<mosaic_0001>
module attributes {stable_mosaic.version = 11 : i64} {
  func.func @_mish_kernel(%arg0: i32, %arg1: memref<1x2048xf32, #tpu.memory_space<vmem>>, %arg2: memref<1x2048xf32, #tpu.memory_space<vmem>>) attributes {dimension_semantics = [#tpu.dimension_semantics<parallel>], iteration_bounds = array<i64: 1>, scalar_prefetch = 0 : i64, scratch_operands = 0 : i64, tpu.core_type = #tpu.core_type<tc>, window_params = [{transform_indices = @transform_0, window_bounds = array<i64: 1, 2048>}, {transform_indices = @transform_1, window_bounds = array<i64: 1, 2048>}]} {
    %c0 = arith.constant 0 : index
    %c0_0 = arith.constant 0 : index
    %0 = vector.load %arg1[%c0, %c0_0] : memref<1x2048xf32, #tpu.memory_space<vmem>>, vector<1x2048xf32>
    %cst = arith.constant 2.000000e+01 : f32
    %1 = vector.broadcast %cst : f32 to vector<1x2048xf32>
    %2 = arith.minimumf %0, %1 : vector<1x2048xf32>
    %3 = math.exp %2 : vector<1x2048xf32>
    %cst_1 = arith.constant 2.000000e+00 : f32
    %4 = vector.broadcast %cst_1 : f32 to vector<1x2048xf32>
    %5 = arith.addf %3, %4 : vector<1x2048xf32>
    %6 = arith.mulf %3, %5 : vector<1x2048xf32>
    %cst_2 = arith.constant 2.000000e+00 : f32
    %7 = vector.broadcast %cst_2 : f32 to vector<1x2048xf32>
    %8 = arith.addf %6, %7 : vector<1x2048xf32>
    %9 = tpu.reciprocal %8 {approx = true} : vector<1x2048xf32> -> vector<1x2048xf32>
    %10 = arith.mulf %8, %9 : vector<1x2048xf32>
    %cst_3 = arith.constant 2.000000e+00 : f32
    %11 = vector.broadcast %cst_3 : f32 to vector<1x2048xf32>
    %12 = arith.subf %11, %10 : vector<1x2048xf32>
    %13 = arith.mulf %9, %12 : vector<1x2048xf32>
    %14 = arith.mulf %8, %13 : vector<1x2048xf32>
    %cst_4 = arith.constant 2.000000e+00 : f32
    %15 = vector.broadcast %cst_4 : f32 to vector<1x2048xf32>
    %16 = arith.subf %15, %14 : vector<1x2048xf32>
    %17 = arith.mulf %13, %16 : vector<1x2048xf32>
    %18 = arith.mulf %6, %17 : vector<1x2048xf32>
    %19 = arith.mulf %0, %18 : vector<1x2048xf32>
    %c0_5 = arith.constant 0 : index
    %c0_6 = arith.constant 0 : index
    %20 = vector.load %arg2[%c0_5, %c0_6] : memref<1x2048xf32, #tpu.memory_space<vmem>>, vector<1x2048xf32>
    tpu.vector_store %arg2[%c0_5, %c0_6], %19 {strides = array<i32>} : memref<1x2048xf32, #tpu.memory_space<vmem>>, vector<1x2048xf32>,
    return
  }
  func.func @transform_0(%arg0: i32) -> (i32, i32) {
    %c0_i32 = arith.constant 0 : i32
    %c0_i32_0 = arith.constant 0 : i32
    return %arg0, %c0_i32 : i32, i32
  }
  func.func @transform_1(%arg0: i32) -> (i32, i32) {
    %c0_i32 = arith.constant 0 : i32
    %c0_i32_0 = arith.constant 0 : i32
    return %arg0, %c0_i32 : i32, i32
  }
}

</mosaic_0001>

<bundles_post_ra>
// kernel: tpu_custom_call.1
= control target key start
LH: loop header
LB: loop body
LE: loop exit
PB: predicated region body
PF: predicated region fallthrough
CT: control target
= control target key end

     0   :  { %6 = vsyncpa [#allocation3], 0  ;;  %s164_s0 = inlined_call_operand.hbm [shape: f32[1,2048], index: 0, kind: input, shape index: {}]   ;;  %s165_s1 = inlined_call_operand.hbm [shape: f32[1,2048], index: 1, kind: output, shape index: {}]  }
   0x1   :  { %7 = vsyncpa [#allocation4], 0  ;;  %s128_s6 = smov [#allocation2]   ;;  %s80_s10 = scalar_lea.hbm %s164_s0, 256 }
   0x2   :  { %s14_s7 = sshll.u32 %s128_s6, 4  ;;  %p81_p0 = scmp.ne.s32.totalorder %s164_s0, %s80_s10  ;;  %s15_s7 = int_to_ptr.vmem [resolvable:$true] %s14_s7 }
   0x3   :  { %p84_p1 = scmp.lt.u32.totalorder %s80_s10, %s164_s0 }
   0x5   :  { %p86_p2 = pnand %p84_p1, %p81_p0 }
   0x7   :  { %89 = shalt.err (!%p86_p2)
}
   0x8   :  { %s90_s15 = scalar_lea.vmem %s15_s7, 256  ;;  %p95_p4 = scmp.lt.s32.totalorder %s15_s7, %s15_s7 }
   0x9   :  { %p91_p3 = scmp.ne.s32.totalorder %s15_s7, %s90_s15  ;;  %p96_p5 = scmp.lt.s32.totalorder %s90_s15, %s90_s15 }
   0xb   :  { %p97_p6 = por %p96_p5, %p95_p4 }
   0xd   :  { %p98_p7 = pnand %p97_p6, %p91_p3 }
   0xf   :  { %101 = shalt.err (!%p98_p7)
}
  0x10   :  { %17 = dma.hbm_to_vmem [thread:$0]  %s164_s0, 256, %s15_s7, [#allocation3]  }
  0x11   :  { %124 = dma.done.wait [#allocation3], 256  }
  0x12   :  { %125 = vsyncadd [#allocation3], 4294967040  ;;  %v21_v0 = vld [vmem:[#allocation2] sm:$0xff]  ;;  %v22_v1 = vld [vmem:[#allocation2 + $0x8] sm:$0xff]  ;;  %s129_s0 = smov [#allocation5]  }
  0x13   :  { %v23_v2 = vmin.f32 %v21_v0, 20.0  ;;  %v24_v3 = vmin.f32 %v22_v1, 20.0  ;;  %s61_s18 = sshll.u32 %s129_s0, 4  ;;  %s62_s18 = int_to_ptr.vmem [resolvable:$true] %s61_s18 }
  0x14   :  { %s102_s19 = scalar_lea.vmem %s62_s18, 256  ;;  %p107_p9 = scmp.lt.s32.totalorder %s62_s18, %s62_s18 }
  0x15   :  { %v25_v4 = vmul.f32 1.442695, %v23_v2  ;;  %v27_v5 = vmul.f32 1.442695, %v24_v3  ;;  %p103_p8 = scmp.ne.s32.totalorder %s62_s18, %s102_s19  ;;  %p108_p10 = scmp.lt.s32.totalorder %s102_s19, %s102_s19 }
  0x17   :  { %72 = vpow2.f32 %v25_v4  ;;  %p109_p11 = por %p108_p10, %p107_p9 }
  0x18   :  { %74 = vpow2.f32 %v27_v5 }
  0x19   :  { %p110_p12 = pnand %p109_p11, %p103_p8 }
  0x21   :  { %v73_v6 = vpop.eup %72 }
  0x22   :  { %v75_v7 = vpop.eup %74  ;;  %v29_v8 = vadd.f32 2.0, %v73_v6 }
  0x23   :  { %v30_v9 = vadd.f32 2.0, %v75_v7 }
  0x24   :  { %v31_v10 = vmul.f32 %v73_v6, %v29_v8 }
  0x25   :  { %v32_v11 = vmul.f32 %v75_v7, %v30_v9 }
  0x26   :  { %v33_v12 = vadd.f32 2.0, %v31_v10 }
  0x27   :  { %v34_v13 = vadd.f32 2.0, %v32_v11 }
  0x28   :  { %76 = vrcp.f32 %v33_v12 }
  0x29   :  { %78 = vrcp.f32 %v34_v13 }
  0x32   :  { %v77_v14 = vpop.eup %76 }
  0x33   :  { %v79_v15 = vpop.eup %78  ;;  %v37_v16 = vmul.f32 %v77_v14, %v33_v12 }
  0x34   :  { %v38_v17 = vmul.f32 %v79_v15, %v34_v13 }
  0x35   :  { %v39_v18 = vsub.f32 2.0, %v37_v16 }
  0x36   :  { %v40_v19 = vsub.f32 2.0, %v38_v17 }
  0x37   :  { %v41_v20 = vmul.f32 %v77_v14, %v39_v18 }
  0x38   :  { %v42_v21 = vmul.f32 %v79_v15, %v40_v19 }
  0x39   :  { %v43_v22 = vmul.f32 %v41_v20, %v33_v12 }
  0x3a   :  { %v44_v23 = vmul.f32 %v42_v21, %v34_v13 }
  0x3b   :  { %v45_v24 = vsub.f32 2.0, %v43_v22 }
  0x3c   :  { %v46_v25 = vsub.f32 2.0, %v44_v23 }
  0x3d   :  { %v47_v26 = vmul.f32 %v45_v24, %v41_v20 }
  0x3e   :  { %v48_v27 = vmul.f32 %v46_v25, %v42_v21 }
  0x3f   :  { %v49_v28 = vmul.f32 %v47_v26, %v31_v10 }
  0x40   :  { %v50_v29 = vmul.f32 %v48_v27, %v32_v11 }
  0x41   :  { %v51_v30 = vmul.f32 %v49_v28, %v21_v0 }
  0x42   :  { %v52_v31 = vmul.f32 %v50_v29, %v22_v1 }
  0x43   :  { %53 = vst [vmem:[#allocation5] sm:$0xff] %v51_v30 }
  0x44   :  { %54 = vst [vmem:[#allocation5 + $0x8] sm:$0xff] %v52_v31 }
  0x45   :  { %113 = shalt.err (!%p110_p12)
}
  0x46   :  { %s114_s22 = scalar_lea.hbm %s165_s1, 256 }
  0x47   :  { %p115_p13 = scmp.ne.s32.totalorder %s165_s1, %s114_s22  ;;  %p118_p0 = scmp.lt.u32.totalorder %s114_s22, %s165_s1 }
  0x49   :  { %p120_p1 = pnand %p118_p0, %p115_p13 }
  0x4b   :  { %123 = shalt.err (!%p120_p1)
}
  0x4c   :  { %64 = dma.vmem_to_hbm [thread:$0]  %s62_s18, 256, %s165_s1, [#allocation4]  }
  0x4d   :  { %126 = dma.done.wait [#allocation4], 256  }
  0x4e   :  { %127 = vsyncadd [#allocation4], 4294967040 }
  0x4f   :  { %68 = vsyncpa [#allocation3], 1 }
  0x50   :  { %69 = vsyncpa [#allocation4], 1 }

</bundles_post_ra>
